<compile_context>
chip_gen: v5e
topology: v5e:2x2
jax: 0.10.0
libtpu: 0.0.40
codegen_flags: <defaults>
</compile_context>

<pallas_src>
import functools

import jax
import jax.numpy as jnp
from jax.experimental import pallas as pl
from jax.experimental.pallas import tpu as pltpu

OUT_LANES = 128  # lane-dense output slab width


def _round_up(n, m):
    return ((n + m - 1) // m) * m


def mlp_kernel(x_ref,
               w1_ref, b1_ref,
               w2_ref, b2_ref,
               w3_ref, b3_ref,
               wh_ref, bh_ref,
               out_ref, *, z_dim):
    # x / weights are bf16; all dots accumulate in f32, elementwise math in f32.
    x = x_ref[...]

    h = jnp.dot(x, w1_ref[...], preferred_element_type=jnp.float32) + b1_ref[...]
    h = jnp.maximum(h, 0.0)

    h = jnp.dot(h.astype(w2_ref.dtype), w2_ref[...],
                preferred_element_type=jnp.float32) + b2_ref[...]
    h = jnp.maximum(h, 0.0)

    h = jnp.dot(h.astype(w3_ref.dtype), w3_ref[...],
                preferred_element_type=jnp.float32) + b3_ref[...]
    h = jnp.maximum(h, 0.0)

    # Fused heads: columns [0, z_dim) = mu, [z_dim, 2*z_dim) = std logits,
    # [2*z_dim, 128) = zero padding (lane-dense store, sliced off in wrapper).
    y = jnp.dot(h.astype(wh_ref.dtype), wh_ref[...],
                preferred_element_type=jnp.float32) + bh_ref[...]

    # softplus (beta=1, threshold=20) applied only to std lanes.
    sp = jnp.where(y > 20.0, y, jnp.log1p(jnp.exp(jnp.minimum(y, 20.0))))
    lane = jax.lax.broadcasted_iota(jnp.int32, y.shape, 1)
    out_ref[...] = jnp.where(lane >= z_dim, sp, y).astype(out_ref.dtype)


@functools.partial(jax.jit, static_argnames=("z_dim", "max_tile_b"))
def mlp_forward(x, params, z_dim, max_tile_b=512):
    B, x_dim = x.shape

    # Batch tile: multiple of 8 (sublane), capped so VMEM stays well inside the
    # default scoped limit on all generations (v5e 16 MiB .. v7x 32 MiB).
    tile_b = min(max_tile_b, _round_up(B, 8))
    b_pad = _round_up(B, tile_b)

    x = x.astype(jnp.bfloat16)
    if b_pad != B:
        x = jnp.pad(x, ((0, b_pad - B), (0, 0)))

    # Fuse the two heads and pad to 128 output lanes.
    wh = jnp.concatenate([params["wmu"], params["wstd"]], axis=1)
    bh = jnp.concatenate([params["bmu"], params["bstd"]], axis=1)
    wh = jnp.pad(wh, ((0, 0), (0, OUT_LANES - 2 * z_dim)))
    bh = jnp.pad(bh, ((0, 0), (0, OUT_LANES - 2 * z_dim)))

    bf16 = lambda w: w.astype(jnp.bfloat16)
    weights = [bf16(params["w1"]), params["b1"],
               bf16(params["w2"]), params["b2"],
               bf16(params["w3"]), params["b3"],
               bf16(wh), bh]

    grid = (b_pad // tile_b,)
    in_specs = [pl.BlockSpec((tile_b, x_dim), lambda i: (i, 0))]
    # Full-array blocks with constant index_map: weights stay resident in VMEM.
    in_specs += [pl.BlockSpec(w.shape, lambda i: (0, 0)) for w in weights]
    out_specs = pl.BlockSpec((tile_b, OUT_LANES), lambda i: (i, 0))

    out = pl.pallas_call(
        functools.partial(mlp_kernel, z_dim=z_dim),
        out_shape=jax.ShapeDtypeStruct((b_pad, OUT_LANES), jnp.float32),
        grid=grid,
        in_specs=in_specs,
        out_specs=out_specs,
        compiler_params=pltpu.CompilerParams(
            dimension_semantics=("parallel",)),
    )(x, *weights)

    # Drop row padding and the zero-padded lanes (those hold softplus(0)=log 2).
    return out[:B, :2 * z_dim]


def init_params(key, x_dim, z_dim):
    """Deterministic init mimicking torch.nn.Linear default (uniform +/- 1/sqrt(fan_in))."""
    def linear(key, fan_in, fan_out):
        kw, kb = jax.random.split(key)
        bound = 1.0 / jnp.sqrt(fan_in)
        # stored as (fan_in, fan_out) == torch W.T
        w = jax.random.uniform(kw, (fan_in, fan_out), jnp.float32, -bound, bound)
        b = jax.random.uniform(kb, (1, fan_out), jnp.float32, -bound, bound)
        return w, b

    keys = jax.random.split(key, 5)
    w1, b1 = linear(keys[0], x_dim, 32)
    w2, b2 = linear(keys[1], 32, 32)
    w3, b3 = linear(keys[2], 32, 16)
    wmu, bmu = linear(keys[3], 16, z_dim)
    wstd, bstd = linear(keys[4], 16, z_dim)
    return dict(w1=w1, b1=b1, w2=w2, b2=b2, w3=w3, b3=b3,
                wmu=wmu, bmu=bmu, wstd=wstd, bstd=bstd)


def reference_forward(x, params):
    """Pure-JAX f32 reference (mirrors torch forward)."""
    def sp(v):
        return jnp.where(v > 20.0, v, jnp.log1p(jnp.exp(jnp.minimum(v, 20.0))))
    h = jax.nn.relu(x @ params["w1"] + params["b1"])
    h = jax.nn.relu(h @ params["w2"] + params["b2"])
    h = jax.nn.relu(h @ params["w3"] + params["b3"])
    mu = h @ params["wmu"] + params["bmu"]
    std = sp(h @ params["wstd"] + params["bstd"])
    return jnp.concatenate([mu, std], axis=1)


if __name__ == "__main__":
    key = jax.random.PRNGKey(0)
    k_x, k_p, k_x2 = jax.random.split(key, 3)

    x_dim, z_dim = 16, 8
    params = init_params(k_p, x_dim, z_dim)

    # Small single-tile case.
    B = 8
    x = jax.random.normal(k_x, (B, x_dim), jnp.float32)
    out = jax.block_until_ready(mlp_forward(x, params, z_dim))
    ref = reference_forward(x, params)
    assert out.shape == (B, 2 * z_dim)
    # bf16 inputs/weights -> loose tolerance vs. the f32 reference.
    assert jnp.allclose(out, ref, atol=5e-2, rtol=5e-2), "mismatch vs. JAX reference (B=8)"

    # Multi-tile case (exercises the batch grid, pipelining and row padding).
    B2 = 40
    x2 = jax.random.normal(k_x2, (B2, x_dim), jnp.float32)
    out2 = jax.block_until_ready(mlp_forward(x2, params, z_dim, max_tile_b=16))
    ref2 = reference_forward(x2, params)
    assert out2.shape == (B2, 2 * z_dim)
    assert jnp.allclose(out2, ref2, atol=5e-2, rtol=5e-2), "mismatch vs. JAX reference (B=40)"

    print("KERNEL_OK")
</pallas_src>

<mosaic_0001>
module attributes {stable_mosaic.version = 11 : i64} {
  func.func @mlp_kernel(%arg0: i32, %arg1: memref<8x16xbf16, #tpu.memory_space<vmem>>, %arg2: memref<16x32xbf16, #tpu.memory_space<vmem>>, %arg3: memref<1x32xf32, #tpu.memory_space<vmem>>, %arg4: memref<32x32xbf16, #tpu.memory_space<vmem>>, %arg5: memref<1x32xf32, #tpu.memory_space<vmem>>, %arg6: memref<32x16xbf16, #tpu.memory_space<vmem>>, %arg7: memref<1x16xf32, #tpu.memory_space<vmem>>, %arg8: memref<16x128xbf16, #tpu.memory_space<vmem>>, %arg9: memref<1x128xf32, #tpu.memory_space<vmem>>, %arg10: memref<8x128xf32, #tpu.memory_space<vmem>>) attributes {dimension_semantics = [#tpu.dimension_semantics<parallel>], iteration_bounds = array<i64: 1>, scalar_prefetch = 0 : i64, scratch_operands = 0 : i64, tpu.core_type = #tpu.core_type<tc>, window_params = [{transform_indices = @transform_0, window_bounds = array<i64: 8, 16>}, {pipeline_mode = #tpu.pipeline_mode<synchronous>, transform_indices = @transform_1, window_bounds = array<i64: 16, 32>}, {pipeline_mode = #tpu.pipeline_mode<synchronous>, transform_indices = @transform_2, window_bounds = array<i64: 1, 32>}, {pipeline_mode = #tpu.pipeline_mode<synchronous>, transform_indices = @transform_3, window_bounds = array<i64: 32, 32>}, {pipeline_mode = #tpu.pipeline_mode<synchronous>, transform_indices = @transform_4, window_bounds = array<i64: 1, 32>}, {pipeline_mode = #tpu.pipeline_mode<synchronous>, transform_indices = @transform_5, window_bounds = array<i64: 32, 16>}, {pipeline_mode = #tpu.pipeline_mode<synchronous>, transform_indices = @transform_6, window_bounds = array<i64: 1, 16>}, {pipeline_mode = #tpu.pipeline_mode<synchronous>, transform_indices = @transform_7, window_bounds = array<i64: 16, 128>}, {pipeline_mode = #tpu.pipeline_mode<synchronous>, transform_indices = @transform_8, window_bounds = array<i64: 1, 128>}, {transform_indices = @transform_9, window_bounds = array<i64: 8, 128>}]} {
    %c0 = arith.constant 0 : index
    %c0_0 = arith.constant 0 : index
    %0 = vector.load %arg1[%c0, %c0_0] : memref<8x16xbf16, #tpu.memory_space<vmem>>, vector<8x16xbf16>
    %c0_1 = arith.constant 0 : index
    %c0_2 = arith.constant 0 : index
    %1 = vector.load %arg2[%c0_1, %c0_2] : memref<16x32xbf16, #tpu.memory_space<vmem>>, vector<16x32xbf16>
    %cst = arith.constant dense<0.000000e+00> : vector<8x32xf32>
    %2 = tpu.matmul %0, %1, %cst {dimension_numbers = #tpu.dot_dimension_numbers<[1], [0], [0], [1], [0, 0, 1, 1], [], []>} : vector<8x16xbf16>, vector<16x32xbf16>, vector<8x32xf32> -> vector<8x32xf32>
    %c0_3 = arith.constant 0 : index
    %c0_4 = arith.constant 0 : index
    %3 = vector.load %arg3[%c0_3, %c0_4] : memref<1x32xf32, #tpu.memory_space<vmem>>, vector<1x32xf32>
    %4 = vector.broadcast %3 : vector<1x32xf32> to vector<8x32xf32>
    %5 = arith.addf %2, %4 : vector<8x32xf32>
    %cst_5 = arith.constant 0.000000e+00 : f32
    %6 = vector.broadcast %cst_5 : f32 to vector<8x32xf32>
    %7 = arith.maximumf %5, %6 : vector<8x32xf32>
    %8 = arith.truncf %7 : vector<8x32xf32> to vector<8x32xbf16>
    %c0_6 = arith.constant 0 : index
    %c0_7 = arith.constant 0 : index
    %9 = vector.load %arg4[%c0_6, %c0_7] : memref<32x32xbf16, #tpu.memory_space<vmem>>, vector<32x32xbf16>
    %cst_8 = arith.constant dense<0.000000e+00> : vector<8x32xf32>
    %10 = tpu.matmul %8, %9, %cst_8 {dimension_numbers = #tpu.dot_dimension_numbers<[1], [0], [0], [1], [0, 0, 1, 1], [], []>} : vector<8x32xbf16>, vector<32x32xbf16>, vector<8x32xf32> -> vector<8x32xf32>
    %c0_9 = arith.constant 0 : index
    %c0_10 = arith.constant 0 : index
    %11 = vector.load %arg5[%c0_9, %c0_10] : memref<1x32xf32, #tpu.memory_space<vmem>>, vector<1x32xf32>
    %12 = vector.broadcast %11 : vector<1x32xf32> to vector<8x32xf32>
    %13 = arith.addf %10, %12 : vector<8x32xf32>
    %cst_11 = arith.constant 0.000000e+00 : f32
    %14 = vector.broadcast %cst_11 : f32 to vector<8x32xf32>
    %15 = arith.maximumf %13, %14 : vector<8x32xf32>
    %16 = arith.truncf %15 : vector<8x32xf32> to vector<8x32xbf16>
    %c0_12 = arith.constant 0 : index
    %c0_13 = arith.constant 0 : index
    %17 = vector.load %arg6[%c0_12, %c0_13] : memref<32x16xbf16, #tpu.memory_space<vmem>>, vector<32x16xbf16>
    %cst_14 = arith.constant dense<0.000000e+00> : vector<8x16xf32>
    %18 = tpu.matmul %16, %17, %cst_14 {dimension_numbers = #tpu.dot_dimension_numbers<[1], [0], [0], [1], [0, 0, 1, 1], [], []>} : vector<8x32xbf16>, vector<32x16xbf16>, vector<8x16xf32> -> vector<8x16xf32>
    %c0_15 = arith.constant 0 : index
    %c0_16 = arith.constant 0 : index
    %19 = vector.load %arg7[%c0_15, %c0_16] : memref<1x16xf32, #tpu.memory_space<vmem>>, vector<1x16xf32>
    %20 = vector.broadcast %19 : vector<1x16xf32> to vector<8x16xf32>
    %21 = arith.addf %18, %20 : vector<8x16xf32>
    %cst_17 = arith.constant 0.000000e+00 : f32
    %22 = vector.broadcast %cst_17 : f32 to vector<8x16xf32>
    %23 = arith.maximumf %21, %22 : vector<8x16xf32>
    %24 = arith.truncf %23 : vector<8x16xf32> to vector<8x16xbf16>
    %c0_18 = arith.constant 0 : index
    %c0_19 = arith.constant 0 : index
    %25 = vector.load %arg8[%c0_18, %c0_19] : memref<16x128xbf16, #tpu.memory_space<vmem>>, vector<16x128xbf16>
    %cst_20 = arith.constant dense<0.000000e+00> : vector<8x128xf32>
    %26 = tpu.matmul %24, %25, %cst_20 {dimension_numbers = #tpu.dot_dimension_numbers<[1], [0], [0], [1], [0, 0, 1, 1], [], []>} : vector<8x16xbf16>, vector<16x128xbf16>, vector<8x128xf32> -> vector<8x128xf32>
    %c0_21 = arith.constant 0 : index
    %c0_22 = arith.constant 0 : index
    %27 = vector.load %arg9[%c0_21, %c0_22] : memref<1x128xf32, #tpu.memory_space<vmem>>, vector<1x128xf32>
    %28 = vector.broadcast %27 : vector<1x128xf32> to vector<8x128xf32>
    %29 = arith.addf %26, %28 : vector<8x128xf32>
    %cst_23 = arith.constant 2.000000e+01 : f32
    %30 = vector.broadcast %cst_23 : f32 to vector<8x128xf32>
    %31 = arith.cmpf ogt, %29, %30 : vector<8x128xf32>
    %cst_24 = arith.constant 2.000000e+01 : f32
    %32 = vector.broadcast %cst_24 : f32 to vector<8x128xf32>
    %33 = arith.minimumf %29, %32 : vector<8x128xf32>
    %34 = math.exp %33 : vector<8x128xf32>
    %35 = math.log1p %34 : vector<8x128xf32>
    %36 = arith.select %31, %29, %35 : vector<8x128xi1>, vector<8x128xf32>
    %37 = tpu.iota {dimensions = array<i32: 1>} : vector<8x128xi32>
    %c8_i32 = arith.constant 8 : i32
    %38 = vector.broadcast %c8_i32 : i32 to vector<8x128xi32>
    %39 = arith.cmpi sge, %37, %38 : vector<8x128xi32>
    %40 = arith.select %39, %36, %29 : vector<8x128xi1>, vector<8x128xf32>
    %c0_25 = arith.constant 0 : index
    %c0_26 = arith.constant 0 : index
    %41 = vector.load %arg10[%c0_25, %c0_26] : memref<8x128xf32, #tpu.memory_space<vmem>>, vector<8x128xf32>
    tpu.vector_store %arg10[%c0_25, %c0_26], %40 {strides = array<i32>} : memref<8x128xf32, #tpu.memory_space<vmem>>, vector<8x128xf32>,
    return
  }
  func.func @transform_0(%arg0: i32) -> (i32, i32) {
    %c0_i32 = arith.constant 0 : i32
    %c0_i32_0 = arith.constant 0 : i32
    return %arg0, %c0_i32 : i32, i32
  }
  func.func @transform_1(%arg0: i32) -> (i32, i32) {
    %c0_i32 = arith.constant 0 : i32
    %c0_i32_0 = arith.constant 0 : i32
    %c0_i32_1 = arith.constant 0 : i32
    return %c0_i32, %c0_i32_0 : i32, i32
  }
  func.func @transform_2(%arg0: i32) -> (i32, i32) {
    %c0_i32 = arith.constant 0 : i32
    %c0_i32_0 = arith.constant 0 : i32
    %c0_i32_1 = arith.constant 0 : i32
    return %c0_i32, %c0_i32_0 : i32, i32
  }
  func.func @transform_3(%arg0: i32) -> (i32, i32) {
    %c0_i32 = arith.constant 0 : i32
    %c0_i32_0 = arith.constant 0 : i32
    %c0_i32_1 = arith.constant 0 : i32
    return %c0_i32, %c0_i32_0 : i32, i32
  }
  func.func @transform_4(%arg0: i32) -> (i32, i32) {
    %c0_i32 = arith.constant 0 : i32
    %c0_i32_0 = arith.constant 0 : i32
    %c0_i32_1 = arith.constant 0 : i32
    return %c0_i32, %c0_i32_0 : i32, i32
  }
  func.func @transform_5(%arg0: i32) -> (i32, i32) {
    %c0_i32 = arith.constant 0 : i32
    %c0_i32_0 = arith.constant 0 : i32
    %c0_i32_1 = arith.constant 0 : i32
    return %c0_i32, %c0_i32_0 : i32, i32
  }
  func.func @transform_6(%arg0: i32) -> (i32, i32) {
    %c0_i32 = arith.constant 0 : i32
    %c0_i32_0 = arith.constant 0 : i32
    %c0_i32_1 = arith.constant 0 : i32
    return %c0_i32, %c0_i32_0 : i32, i32
  }
  func.func @transform_7(%arg0: i32) -> (i32, i32) {
    %c0_i32 = arith.constant 0 : i32
    %c0_i32_0 = arith.constant 0 : i32
    %c0_i32_1 = arith.constant 0 : i32
    return %c0_i32, %c0_i32_0 : i32, i32
  }
  func.func @transform_8(%arg0: i32) -> (i32, i32) {
    %c0_i32 = arith.constant 0 : i32
    %c0_i32_0 = arith.constant 0 : i32
    %c0_i32_1 = arith.constant 0 : i32
    return %c0_i32, %c0_i32_0 : i32, i32
  }
  func.func @transform_9(%arg0: i32) -> (i32, i32) {
    %c0_i32 = arith.constant 0 : i32
    %c0_i32_0 = arith.constant 0 : i32
    return %arg0, %c0_i32 : i32, i32
  }
}

</mosaic_0001>

<bundles_post_ra>
// kernel: mlp_forward.1
= control target key start
LH: loop header
LB: loop body
LE: loop exit
PB: predicated region body
PF: predicated region fallthrough
CT: control target
= control target key end

     0   :  { %vm47_vm0 = vcmask 130048   ;;  %s364_s0 = inlined_call_operand.vmem [shape: bf16[8,16], index: 0, kind: input, shape index: {}]   ;;  %s365_s1 = inlined_call_operand.vmem [shape: bf16[16,32], index: 1, kind: input, shape index: {}]   ;;  %s366_s2 = inlined_call_operand.vmem [shape: f32[1,32], index: 2, kind: input, shape index: {}]   ;;  %s367_s3 = inlined_call_operand.vmem [shape: bf16[32,32], index: 3, kind: input, shape index: {}]   ;;  %s368_s4 = inlined_call_operand.vmem [shape: f32[1,32], index: 4, kind: input, shape index: {}]   ;;  %s369_s5 = inlined_call_operand.vmem [shape: bf16[32,16], index: 5, kind: input, shape index: {}]   ;;  %s370_s6 = inlined_call_operand.vmem [shape: f32[1,16], index: 6, kind: input, shape index: {}]   ;;  %s371_s7 = inlined_call_operand.vmem [shape: bf16[16,128], index: 7, kind: input, shape index: {}]   ;;  %s372_s8 = inlined_call_operand.vmem [shape: f32[1,128], index: 8, kind: input, shape index: {}]   ;;  %s373_s9 = inlined_call_operand.hbm [shape: f32[8,128], index: 9, kind: output, shape index: {}]  }
   0x1   :  { %v234_v0 = vld [vmem:[%s365_s1] sm:$0xff] }
   0x2   :  { %v34_v1 = vld [vmem:[%s364_s0] sm:$0xf]  ;;  %58 = vmatpush.bf16.msra.mxu0 %v234_v0 }
   0x3   :  { %14 = vsyncpa [#allocation3], 0  ;;  %v236_v2 = vld [vmem:[%s367_s3 + $0x8] sm:$0xff]  ;;  %v235_v3 = vld [vmem:[%s367_s3] sm:$0xff]  ;;  %vm86_vm1 = vcmask 261120   ;;  %v185_v34 = vlaneseq  ;;  %s197_s26 = sshll.u32 %s373_s9, 4  ;;  %s198_s26 = int_to_ptr.hbm [resolvable:$true] %s197_s26 }
   0x4   :  { %96 = vmatpush.bf16.msra.mxu1 %v236_v2  ;;  %v241_v4 = vld [vmem:[%s366_s2] ss:$0 sm:$0xff]  ;;  %v238_v10 = vld [vmem:[%s369_s5 + $0x8] sm:$0xff] }
   0x5   :  { %210 = vmatmul.msk.bf16.vlgmr.msra.gmra.mxu0 %vm47_vm0, %v34_v1  ;;  %134 = vmatpush.bf16.msra.mxu2 %v238_v10  ;;  %v237_v11 = vld [vmem:[%s369_s5] sm:$0xff]  ;;  %v186_v37 = vand.u32 127, %v185_v34 }
   0x6   :  { %v242_v12 = vld [vmem:[%s368_s4] ss:$0 sm:$0xff] }
   0x7   :  { %v239_v18 = vld [vmem:[%s371_s7] sm:$0xff]  ;;  %vm187_vm3 = vcmp.ge.s32.totalorder %v186_v37, 8 }
   0x8   :  { %97 = vmatpush.bf16.msra.mxu1 %v235_v3  ;;  %165 = vmatpush.bf16.msra.mxu3 %v239_v18  ;;  %v243_v19 = vld [vmem:[%s370_s6] ss:$0 sm:$0xff]  ;;  %s275_s6 = smov [#allocation2]  }
   0x9   :  { %135 = vmatpush.bf16.msra.mxu2 %v237_v11  ;;  %v244_v25 = vld [vmem:[%s372_s8] ss:$0 sm:$0xff]  ;;  %s195_s7 = sshll.u32 %s275_s6, 4  ;;  %s196_s7 = int_to_ptr.vmem [resolvable:$true] %s195_s7 }
  0x82   :  { %v60_v5 = vpop.f32.mrf.mxu0 }
  0x83   :  { %v61_v6 = vadd.f32 %v241_v4, %v60_v5 }
  0x85   :  { %v64_v7 = vmax.f32 %v61_v6, 0.0 }
  0x87   :  { %v65_v8 = vpack.c.bf16 %v64_v7, %v64_v7 }
  0x89   :  { %219 = vmatmul.msk.bf16.vlgmr.msra.gmra.mxu1 %vm86_vm1, %v65_v8 }
  0x8a   :  { %v62_v9 = vpop.f32.mrf.mxu0 }
 0x106   :  { %v99_v13 = vpop.f32.mrf.mxu1 }
 0x107   :  { %v100_v14 = vadd.f32 %v242_v12, %v99_v13 }
 0x109   :  { %v103_v15 = vmax.f32 %v100_v14, 0.0 }
 0x10b   :  { %v104_v16 = vpack.c.bf16 %v103_v15, %v103_v15 }
 0x10d   :  { %228 = vmatmul.msk.bf16.vlgmr.msra.gmra.mxu2 %vm86_vm1, %v104_v16 }
 0x10e   :  { %v101_v17 = vpop.f32.mrf.mxu1 }
 0x190   :  { %v137_v20 = vpop.f32.mrf.mxu2 }
 0x191   :  { %v138_v21 = vadd.f32 %v243_v19, %v137_v20 }
 0x193   :  { %v141_v22 = vmax.f32 %v138_v21, 0.0 }
 0x195   :  { %v142_v23 = vpack.c.bf16 %v141_v22, %v141_v22 }
 0x197   :  { %233 = vmatmul.msk.bf16.vlgmr.msra.gmra.mxu3 %vm47_vm0, %v142_v23 }
 0x198   :  { %v139_v24 = vpop.f32.mrf.mxu2 }
 0x21a   :  { %v167_v26 = vpop.f32.mrf.mxu3 }
 0x21b   :  { %v168_v27 = vadd.f32 %v244_v25, %v167_v26 }
 0x21d   :  { %v172_v28 = vmin.f32 %v168_v27, 20.0  ;;  %vm171_vm4 = vcmp.gt.f32.partialorder %v168_v27, 20.0 }
 0x21f   :  { %v173_v29 = vmul.f32 1.442695, %v172_v28 }
 0x221   :  { %245 = vpow2.f32 %v173_v29 }
 0x222   :  { %v169_v30 = vpop.f32.mrf.mxu3 }
 0x227   :  { %v246_v31 = vpop.eup %245 }
 0x228   :  { %v175_v32 = vadd.f32 1.0, %v246_v31  ;;  %v178_v33 = vmul.f32 -0.5, %v246_v31  ;;  %v181_v36 = vand.u32 2147483647, %v246_v31 }
 0x22a   :  { %247 = vlog2.f32 %v175_v32  ;;  %v179_v35 = vadd.f32 1.0, %v178_v33  ;;  %vm182_vm2 = vcmp.lt.f32.partialorder %v181_v36, 0.0004427343 }
 0x22c   :  { %v180_v40 = vmul.f32 %v246_v31, %v179_v35 }
 0x230   :  { %v248_v38 = vpop.eup %247 }
 0x231   :  { %v177_v39 = vmul.f32 0.6931472, %v248_v38 }
 0x233   :  { %v183_v41 = vsel %vm182_vm2, %v180_v40, %v177_v39 }
 0x234   :  { %v184_v42 = vsel %vm171_vm4, %v168_v27, %v183_v41 }
 0x235   :  { %v188_v43 = vsel %vm187_vm3, %v184_v42, %v168_v27 }
 0x236   :  { %189 = vst [vmem:[#allocation2] sm:$0xff] %v188_v43 }
 0x237   :  { %200 = dma.vmem_to_hbm [thread:$0]  %s196_s7, 128, %s198_s26, [#allocation3]  }
 0x238   :  { %273 = dma.done.wait [#allocation3], 128  }
 0x239   :  { %274 = vsyncadd [#allocation3], 4294967168 }
 0x23a   :  { %205 = vsyncpa [#allocation3], 1 }

</bundles_post_ra>
